<compile_context>
chip_gen: v5e
topology: v5e:2x2
jax: 0.10.0
libtpu: 0.0.40
codegen_flags: <defaults>
</compile_context>

<pallas_src>
import functools

import jax
import jax.numpy as jnp
import numpy as np
from jax.experimental import pallas as pl
from jax.experimental.pallas import tpu as pltpu


def build_quotient_conv_kernel(kernel_fields):
    """Replicates Quotient.init_kernel: (2k-1, 2k-1) kernel with 1s in the
    top-left k x k block except position (k-1, k-1)."""
    k = kernel_fields
    ksize = 2 * k - 1
    kern = np.zeros((ksize, ksize), dtype=np.float32)
    for i in range(k):
        for j in range(k):
            if not (i == k - 1 and j == k - 1):
                kern[i, j] = 1.0
    pad = ksize // 2  # == k - 1; matches forward's padding=self.kernel.size(-1)//2
    return kern, pad


def _taps_from_kernel(kern, pad):
    """Static (oi, oj, wt) offsets: conv[i, j] += wt * logp[i + oi, j + oj]."""
    taps = [(i - pad, j - pad, float(kern[i, j]))
            for i in range(kern.shape[0])
            for j in range(kern.shape[1])
            if kern[i, j] != 0.0]
    if not taps:                       # degenerate kernel_fields == 1 -> conv output is 0
        taps = [(0, 0, 0.0)]
    return taps


def _build_tap_masks_and_rolls(taps, N, H, W):
    """Host-side static data for the kernel.

    masks[t, l] = wt if the source pixel (i+oi, j+oj) of flat lane l lies inside its (H, W)
    plane, else 0.  The mask is what makes the flat pltpu.roll safe: every lane that wraps
    across a plane/array boundary is rejected, matching zero-padded "same" convolution.

    rolls = ((row_shift, ((col_shift, mask_row), ...)), ...): taps grouped by stencil row so
    the kernel rolls once per row and derives per-column variants with small lane rolls.
    """
    HW = H * W
    L = N * HW
    l = np.arange(L)
    i_idx = (l % HW) // W
    j_idx = l % W

    masks = np.zeros((len(taps), L), dtype=np.float32)
    grouped = {}
    for t, (oi, oj, wt) in enumerate(taps):
        valid = ((i_idx + oi >= 0) & (i_idx + oi < H) &
                 (j_idx + oj >= 0) & (j_idx + oj < W))
        masks[t] = valid.astype(np.float32) * wt
        row_shift = (-(oi * W)) % L
        col_shift = (-oj) % L
        grouped.setdefault(row_shift, []).append((col_shift, t))
    rolls = tuple((rs, tuple(cols)) for rs, cols in grouped.items())
    return masks, rolls


def make_quotient_kernel(rolls, bt, PN):
    """rolls: static grouped flat-roll schedule; bt: batch rows per block; PN: components."""

    def quotient_kernel(x_ref, w_ref, m_ref, o_ref):
        # x_ref: (bt, L)    flattened logp rows       (lane-dense)
        # w_ref: (PN, L)    flattened weights
        # m_ref: (T,  L)    per-tap boundary masks * tap weight
        # o_ref: (bt*PN, L) flattened output (full (8,128) tiles at the default shape)
        x = x_ref[...]
        acc = jnp.zeros_like(x)
        for row_shift, cols in rolls:                   # static unroll over stencil rows
            base = x if row_shift == 0 else pltpu.roll(x, row_shift, axis=1)
            for col_shift, t in cols:                   # small lane rolls per column offset
                shifted = base if col_shift == 0 else pltpu.roll(base, col_shift, axis=1)
                # Host-built mask zeroes every wrapped / out-of-plane lane (and carries the
                # tap weight), so acc equals the zero-padded "same" conv of each (H,W) plane.
                acc = acc + shifted * m_ref[pl.ds(t, 1), :]

        w = w_ref[...]                                  # (PN, L)
        # out[b*PN + pn, l] = weights[pn, l] + conv[b, l]; per-b 2-D stores keep the output
        # slab sublane+lane dense -> dense writeback DMA.
        for b in range(bt):                             # static unroll (bt is small)
            o_ref[pl.ds(b * PN, PN), :] = acc[b:b + 1, :] + w

    return quotient_kernel


@functools.partial(jax.jit, static_argnames=("kernel_fields",))
def quotient_forward(logp, weights, *, kernel_fields):
    """logp: (B, N, H, W) f32; weights: (N, N, partitions) f32 with partitions == H*W."""
    B, N, H, W = logp.shape
    PN, CN, partitions = weights.shape
    assert PN == N and CN == N
    assert partitions == H * W, "broadcast add requires partitions == H*W"

    L = N * H * W
    logp_flat = logp.reshape(B, L)                        # contiguous -> free reshape
    weights_flat = weights.reshape(PN, CN * partitions)   # (PN, L), matches einops layout

    kern, pad = build_quotient_conv_kernel(kernel_fields)
    taps = _taps_from_kernel(kern, pad)
    masks_np, rolls = _build_tap_masks_and_rolls(taps, N, H, W)
    masks = jnp.asarray(masks_np)
    T = masks_np.shape[0]

    cost = pl.CostEstimate(
        flops=int(2 * T * B * L + B * PN * L),
        transcendentals=0,
        bytes_accessed=int(4 * (B * L + PN * L + T * L + B * PN * L)),
    )

    total_bytes = 4 * (B * L + PN * L + T * L + B * PN * L)
    GRIDLESS_BUDGET = 16 * 1024 * 1024       # safe inside every generation's scoped VMEM

    if total_bytes <= GRIDLESS_BUDGET:
        # Whole problem resident in VMEM, one grid step: no per-step pipeline overhead.
        out_flat = pl.pallas_call(
            make_quotient_kernel(rolls, B, PN),
            out_shape=jax.ShapeDtypeStruct((B * PN, L), jnp.float32),
            in_specs=[
                pl.BlockSpec(memory_space=pltpu.MemorySpace.VMEM),
                pl.BlockSpec(memory_space=pltpu.MemorySpace.VMEM),
                pl.BlockSpec(memory_space=pltpu.MemorySpace.VMEM),
            ],
            out_specs=pl.BlockSpec(memory_space=pltpu.MemorySpace.VMEM),
            compiler_params=pltpu.CompilerParams(vmem_limit_bytes=32 * 1024 * 1024),
            cost_estimate=cost,
        )(logp_flat, weights_flat, masks)
    else:
        # Large problems: tile over batch so double-buffered blocks fit VMEM on every
        # generation (v7x has only 64 MiB physical); "parallel" lets v7x's two TensorCores
        # split the batch axis.  bt respects the (8,128) sublane constraint.
        # TODO(synk): if a single batch row (PN*L) ever exceeds VMEM, also tile PN / L.
        budget = 24 * 1024 * 1024

        def block_bytes(bt):
            # BlockSpec-pipelined inputs/outputs are double-buffered.
            return 4 * 2 * (bt * L + PN * L + T * L + bt * PN * L)

        bt = B
        for d in sorted(d for d in range(1, B + 1)
                        if B % d == 0 and (d == B or d % 8 == 0) and d <= 256):
            if block_bytes(d) <= budget:
                bt = d                                    # largest fitting divisor wins

        out_flat = pl.pallas_call(
            make_quotient_kernel(rolls, bt, PN),
            out_shape=jax.ShapeDtypeStruct((B * PN, L), jnp.float32),
            grid=(B // bt,),
            in_specs=[
                pl.BlockSpec((bt, L), lambda i: (i, 0)),
                pl.BlockSpec((PN, L), lambda i: (0, 0)),
                pl.BlockSpec((T, L), lambda i: (0, 0)),
            ],
            out_specs=pl.BlockSpec((bt * PN, L), lambda i: (i, 0)),
            compiler_params=pltpu.CompilerParams(
                dimension_semantics=("parallel",),
                vmem_limit_bytes=48 * 1024 * 1024,
            ),
            cost_estimate=cost,
        )(logp_flat, weights_flat, masks)

    return out_flat.reshape(B, PN, N, H, W)


def quotient_reference(logp, weights, kernel_fields):
    """Plain-JAX reference mirroring the PyTorch forward exactly."""
    B, N, H, W = logp.shape
    kern, pad = build_quotient_conv_kernel(kernel_fields)
    x = logp.reshape(B * N, 1, H, W)
    conv = jax.lax.conv_general_dilated(
        x, jnp.asarray(kern)[None, None],
        window_strides=(1, 1),
        padding=[(pad, pad), (pad, pad)],
        dimension_numbers=("NCHW", "OIHW", "NCHW"),
    )
    x = conv.reshape(B, 1, N, H, W)
    w = weights.reshape(1, N, N, weights.shape[-1] // W, W)
    return w + x


if __name__ == "__main__":
    # Quotient(components=4, partitions=64, kernel_type="s-square-2")
    components = 4
    H, W = 8, 8
    partitions = H * W                 # must equal spatial size for the broadcast add
    kernel_fields = 2                  # "s-square-2" -> 3x3 kernel, padding 1
    B = 2

    key = jax.random.PRNGKey(0)
    k_w, k_x = jax.random.split(key)
    # torch.rand -> uniform [0, 1)
    weights = jax.random.uniform(k_w, (components, components, partitions),
                                 dtype=jnp.float32)
    logp = jax.random.normal(k_x, (B, components, H, W), dtype=jnp.float32)

    out = quotient_forward(logp, weights, kernel_fields=kernel_fields)
    out = jax.block_until_ready(out)

    ref = quotient_reference(logp, weights, kernel_fields)
    assert out.shape == (B, components, components, H, W), out.shape
    np.testing.assert_allclose(np.asarray(out), np.asarray(ref), rtol=1e-5, atol=1e-5)

    print("KERNEL_OK")
</pallas_src>

<mosaic_0001>
module attributes {stable_mosaic.version = 11 : i64} {
  func.func @quotient_kernel(%arg0: memref<2x256xf32, #tpu.memory_space<vmem>>, %arg1: memref<4x256xf32, #tpu.memory_space<vmem>>, %arg2: memref<3x256xf32, #tpu.memory_space<vmem>>, %arg3: memref<8x256xf32, #tpu.memory_space<vmem>>) attributes {dimension_semantics = [], scalar_prefetch = 0 : i64, scratch_operands = 0 : i64, tpu.core_type = #tpu.core_type<tc>} {
    %c0 = arith.constant 0 : index
    %c0_0 = arith.constant 0 : index
    %0 = vector.load %arg0[%c0, %c0_0] : memref<2x256xf32, #tpu.memory_space<vmem>>, vector<2x256xf32>
    %cst = arith.constant 0.000000e+00 : f32
    %1 = vector.broadcast %cst : f32 to vector<2x256xf32>
    %c8_i32 = arith.constant 8 : i32
    %2 = tpu.dynamic_rotate %0 by %c8_i32 dim 1 : vector<2x256xf32>, i32 -> vector<2x256xf32>
    %c1_i32 = arith.constant 1 : i32
    %3 = tpu.dynamic_rotate %2 by %c1_i32 dim 1 : vector<2x256xf32>, i32 -> vector<2x256xf32>
    %c0_1 = arith.constant 0 : index
    %c0_2 = arith.constant 0 : index
    %4 = vector.load %arg2[%c0_1, %c0_2] : memref<3x256xf32, #tpu.memory_space<vmem>>, vector<1x256xf32>
    %5 = vector.broadcast %4 : vector<1x256xf32> to vector<2x256xf32>
    %6 = arith.mulf %3, %5 : vector<2x256xf32>
    %7 = arith.addf %1, %6 : vector<2x256xf32>
    %c1 = arith.constant 1 : index
    %c0_3 = arith.constant 0 : index
    %8 = vector.load %arg2[%c1, %c0_3] : memref<3x256xf32, #tpu.memory_space<vmem>>, vector<1x256xf32>
    %9 = vector.broadcast %8 : vector<1x256xf32> to vector<2x256xf32>
    %10 = arith.mulf %2, %9 : vector<2x256xf32>
    %11 = arith.addf %7, %10 : vector<2x256xf32>
    %c1_i32_4 = arith.constant 1 : i32
    %12 = tpu.dynamic_rotate %0 by %c1_i32_4 dim 1 : vector<2x256xf32>, i32 -> vector<2x256xf32>
    %c2 = arith.constant 2 : index
    %c0_5 = arith.constant 0 : index
    %13 = vector.load %arg2[%c2, %c0_5] : memref<3x256xf32, #tpu.memory_space<vmem>>, vector<1x256xf32>
    %14 = vector.broadcast %13 : vector<1x256xf32> to vector<2x256xf32>
    %15 = arith.mulf %12, %14 : vector<2x256xf32>
    %16 = arith.addf %11, %15 : vector<2x256xf32>
    %c0_6 = arith.constant 0 : index
    %c0_7 = arith.constant 0 : index
    %17 = vector.load %arg1[%c0_6, %c0_7] : memref<4x256xf32, #tpu.memory_space<vmem>>, vector<4x256xf32>
    %18 = vector.extract_strided_slice %16 {offsets = [0, 0], sizes = [1, 256], strides = [1, 1]} : vector<2x256xf32> to vector<1x256xf32>
    %19 = vector.broadcast %18 : vector<1x256xf32> to vector<4x256xf32>
    %20 = arith.addf %19, %17 : vector<4x256xf32>
    %c0_8 = arith.constant 0 : index
    %c0_9 = arith.constant 0 : index
    %21 = vector.load %arg3[%c0_8, %c0_9] : memref<8x256xf32, #tpu.memory_space<vmem>>, vector<4x256xf32>
    tpu.vector_store %arg3[%c0_8, %c0_9], %20 {strides = array<i32>} : memref<8x256xf32, #tpu.memory_space<vmem>>, vector<4x256xf32>,
    %22 = vector.extract_strided_slice %16 {offsets = [1, 0], sizes = [1, 256], strides = [1, 1]} : vector<2x256xf32> to vector<1x256xf32>
    %23 = vector.broadcast %22 : vector<1x256xf32> to vector<4x256xf32>
    %24 = arith.addf %23, %17 : vector<4x256xf32>
    %c4 = arith.constant 4 : index
    %c0_10 = arith.constant 0 : index
    %25 = vector.load %arg3[%c4, %c0_10] : memref<8x256xf32, #tpu.memory_space<vmem>>, vector<4x256xf32>
    tpu.vector_store %arg3[%c4, %c0_10], %24 {strides = array<i32>} : memref<8x256xf32, #tpu.memory_space<vmem>>, vector<4x256xf32>,
    return
  }
}

</mosaic_0001>

<bundles_post_ra>
// kernel: quotient_forward.1
= control target key start
LH: loop header
LB: loop body
LE: loop exit
PB: predicated region body
PF: predicated region fallthrough
CT: control target
= control target key end

     0   :  { %s118_s14 = smov 8   ;;  %s119_s15 = smov 1   ;;  %v25_v6 = vlaneseq  ;;  %s167_s0 = inlined_call_operand.vmem [shape: f32[2,256], index: 0, kind: input, shape index: {}]   ;;  %s168_s1 = inlined_call_operand.vmem [shape: f32[4,256], index: 1, kind: input, shape index: {}]   ;;  %s169_s2 = inlined_call_operand.vmem [shape: f32[3,256], index: 2, kind: input, shape index: {}]   ;;  %s170_s3 = inlined_call_operand.vmem [shape: f32[8,256], index: 3, kind: output, shape index: {}]  }
   0x1   :  { %v14_v0 = vld [vmem:[%s167_s0] sm:$0xf] }
   0x2   :  { %16 = vst [vmem:[#allocation1] ss:$4 sm:$0xff] %v14_v0  ;;  %v80_v5 = vld [vmem:[%s168_s1] sm:$0xff]  ;;  %v26_v8 = vand.u32 127, %v25_v6 }
   0x3   :  { %v114_v16 = vld [vmem:[%s169_s2 + $0x1] ss:$4 sm:$0x3]  ;;  %v37_v17 = vld [vmem:[%s169_s2] ss:$4 sm:$0x3] }
   0x4   :  { %vm27_vm0 = vcmp.lt.s32.totalorder %v26_v8, 8  ;;  %v50_v18 = vperm.slane %v114_v16, 0  ;;  %v115_v19 = vld [vmem:[%s169_s2 + $0x2] ss:$4 sm:$0x3]  ;;  %v51_v20 = vperm.slane %v114_v16, 1 }
   0x5   :  { %vm34_vm1 = vcmp.lt.s32.totalorder %v26_v8, 1  ;;  %v39_v22 = vperm.slane %v37_v17, 0  ;;  %v40_v23 = vperm.slane %v37_v17, 1  ;;  %v72_v24 = vperm.slane %v115_v19, 0 }
   0x6   :  { %v73_v25 = vperm.slane %v115_v19, 1 }
   0x9   :  { %v17_v1 = vld.sshfl [vmem:[#allocation1] sm:$0xff pattern:$0x73625140]  ;;  %v18_v2 = vld.sshfl [vmem:[#allocation1 + $0x8] sm:$0xff pattern:$0x73625140] }
   0xa   :  { %21 = vrot.lane.b32.xlu0 %v17_v1, %s118_s14  ;;  %58 = vst [vmem:[#allocation1] ss:$4 sm:$0xff] %v14_v0 }
  0x11   :  { %v59_v3 = vld.sshfl [vmem:[#allocation1] sm:$0xff pattern:$0x73625140]  ;;  %v60_v4 = vld.sshfl [vmem:[#allocation1 + $0x8] sm:$0xff pattern:$0x73625140] }
  0x12   :  { %23 = vrot.lane.b32.xlu0 %v18_v2, %s118_s14  ;;  %63 = vrot.lane.b32.xlu2 %v59_v3, %s119_s15  ;;  %84 = vst [vmem:[#allocation1] ss:$2 sm:$0xff] %v80_v5 }
  0x19   :  { %v85_v12 = vld.sshfl [vmem:[#allocation1] sm:$0xff pattern:$0x75316420]  ;;  %v86_v13 = vld.sshfl [vmem:[#allocation1 + $0x8] sm:$0xff pattern:$0x75316420] }
  0x1a   :  { %65 = vrot.lane.b32.xlu2 %v60_v4, %s119_s15  ;;  %95 = vst [vmem:[#allocation1] ss:$2 sm:$0xff] %v80_v5 }
  0x21   :  { %v96_v41 = vld.sshfl [vmem:[#allocation1] sm:$0xff pattern:$0x75316420]  ;;  %v97_v42 = vld.sshfl [vmem:[#allocation1 + $0x8] sm:$0xff pattern:$0x75316420] }
  0x6c   :  { %v64_v14 = vpop.permute.xlu2 %63 }
  0x74   :  { %v66_v21 = vpop.permute.xlu2 %65 }
  0x75   :  { %v67_v27 = vsel %vm34_vm1, %v64_v14, %v66_v21  ;;  %v68_v28 = vsel %vm34_vm1, %v66_v21, %v64_v14 }
  0x76   :  { %v76_v35 = vmul.f32 %v72_v24, %v68_v28  ;;  %v77_v36 = vmul.f32 %v73_v25, %v67_v27 }
  0x7c   :  { %v22_v7 = vpop.permute.xlu0 %21 }
  0x84   :  { %v24_v9 = vpop.permute.xlu0 %23 }
  0x85   :  { %v29_v10 = vsel %vm27_vm0, %v24_v9, %v22_v7  ;;  %v28_v11 = vsel %vm27_vm0, %v22_v7, %v24_v9 }
  0x86   :  { %30 = vrot.lane.b32.xlu1 %v29_v10, %s119_s15  ;;  %v54_v31 = vmul.f32 %v50_v18, %v29_v10  ;;  %v55_v32 = vmul.f32 %v51_v20, %v28_v11 }
  0x8e   :  { %32 = vrot.lane.b32.xlu1 %v28_v11, %s119_s15 }
  0xf8   :  { %v31_v15 = vpop.permute.xlu1 %30 }
 0x100   :  { %v33_v26 = vpop.permute.xlu1 %32 }
 0x101   :  { %v35_v29 = vsel %vm34_vm1, %v31_v15, %v33_v26  ;;  %v36_v30 = vsel %vm34_vm1, %v33_v26, %v31_v15 }
 0x102   :  { %v43_v33 = vmul.f32 %v39_v22, %v36_v30  ;;  %v44_v34 = vmul.f32 %v40_v23, %v35_v29 }
 0x104   :  { %v56_v37 = vadd.f32 %v54_v31, %v43_v33  ;;  %v57_v38 = vadd.f32 %v55_v32, %v44_v34 }
 0x106   :  { %v78_v39 = vadd.f32 %v76_v35, %v56_v37  ;;  %v79_v40 = vadd.f32 %v77_v36, %v57_v38 }
 0x108   :  { %v81_v43 = vperm.slane %v78_v39, 0  ;;  %v82_v44 = vperm.slane %v79_v40, 0  ;;  %v93_v45 = vperm.slane %v78_v39, 1  ;;  %v94_v46 = vperm.slane %v79_v40, 1 }
 0x10a   :  { %v89_v47 = vadd.f32 %v85_v12, %v81_v43  ;;  %v90_v48 = vadd.f32 %v86_v13, %v82_v44  ;;  %v100_v49 = vadd.f32 %v96_v41, %v93_v45  ;;  %v101_v50 = vadd.f32 %v97_v42, %v94_v46 }
 0x10c   :  { %91 = vst [vmem:[%s170_s3] sm:$0xf] %v89_v47  ;;  %v104_v51 = vrot.slane %v100_v49, 4  ;;  %v105_v52 = vrot.slane %v101_v50, 4 }
 0x10d   :  { %92 = vst [vmem:[%s170_s3 + $0x8] sm:$0xf] %v90_v48 }
 0x10e   :  { %108 = vst [vmem:[%s170_s3] sm:$0xf0] %v104_v51 }
 0x10f   :  { %109 = vst [vmem:[%s170_s3 + $0x8] sm:$0xf0] %v105_v52 }

</bundles_post_ra>
